<compile_context>
chip_gen: v6e
topology: v6e:2x2x1
jax: 0.10.0
libtpu: 0.0.40
codegen_flags: <defaults>
</compile_context>

<pallas_src>
import functools

import jax
import jax.numpy as jnp
from jax.experimental import pallas as pl
from jax.experimental.pallas import tpu as pltpu


def _vmem_capacity_bytes():
    try:
        return int(pltpu.get_tpu_info().vmem_capacity_bytes)
    except Exception:
        # Conservative fallback (v7x physical VMEM); safe on all generations.
        return 64 * 1024 * 1024


def _pick_tile_n(n, c, itemsize):
    """Largest row tile whose double-buffered block + f32 temps fit ~1/3 VMEM."""
    vmem_cap = _vmem_capacity_bytes()
    budget = vmem_cap // 3
    # 2x (T, C) input blocks (double buffered, input dtype)
    # + ~5x (T, C)-equivalent f32 temporaries (cast, exp chain, select, ...).
    per_row = 2 * c * itemsize + 5 * c * 4
    max_rows = max(8, budget // per_row)
    n_rounded = ((n + 7) // 8) * 8
    tile = min(int(max_rows), n_rounded)
    tile = max(8, (tile // 8) * 8)
    return int(tile)


def _ce_kernel(logits_ref, tgt_ref, w_ref, out_ref, *, eps, n_rows, tile_n):
    """One batch tile: writes sum_i w_i * loss_i (valid rows only) to out block."""
    i = pl.program_id(0)

    x = logits_ref[...]                                          # (T, C) input dtype
    t, c = x.shape
    xf = x.astype(jnp.float32)                                   # (T, C) f32

    # Numerically stable logsumexp over the class (lane) axis.
    m = jnp.max(xf, axis=-1, keepdims=True)                      # (T, 1)
    sum_exp = jnp.sum(jnp.exp(xf - m), axis=-1, keepdims=True)   # (T, 1)
    lse = jnp.log(sum_exp)                                       # (T, 1)

    # Target logit gathered from the raw tile via a (1, C) iota broadcast.
    classes = jax.lax.broadcasted_iota(jnp.int32, (1, c), 1)     # (1, C)
    tgt = tgt_ref[...]                                           # (T, 1) int32
    x_t = jnp.sum(jnp.where(classes == tgt, xf, 0.0),
                  axis=-1, keepdims=True)                        # (T, 1)
    z_t = x_t - m                                                # (T, 1)

    nll = lse - z_t                                              # (T, 1)
    if eps > 0.0:
        sum_x = jnp.sum(xf, axis=-1, keepdims=True)              # (T, 1)
        sum_z = sum_x - float(c) * m                             # (T, 1)
        smooth = lse - sum_z / float(c)                          # (T, 1)
        per_sample = (1.0 - eps) * nll + eps * smooth
    else:
        per_sample = nll

    # Row-validity mask for the ragged last block (also sanitizes NaN/Inf
    # coming from out-of-bounds garbage rows: where() drops them entirely).
    row = i * tile_n + jax.lax.broadcasted_iota(jnp.int32, (t, 1), 0)
    valid = row < n_rows
    weighted = jnp.where(valid, per_sample * w_ref[...], 0.0)    # (T, 1)
    partial = jnp.sum(weighted)                                  # scalar

    out_ref[...] = jnp.broadcast_to(partial, out_ref.shape).astype(jnp.float32)


def _cross_entropy_pallas(logits, targets, weight, eps):
    n, c = logits.shape
    tile_n = _pick_tile_n(n, c, jnp.dtype(logits.dtype).itemsize)
    num_tiles = pl.cdiv(n, tile_n)

    tgt2d = targets.reshape(n, 1).astype(jnp.int32)
    w2d = weight.reshape(n, 1).astype(jnp.float32)

    kernel = functools.partial(
        _ce_kernel, eps=float(eps), n_rows=int(n), tile_n=int(tile_n))

    vmem_cap = _vmem_capacity_bytes()

    out = pl.pallas_call(
        kernel,
        out_shape=jax.ShapeDtypeStruct((num_tiles, 8, 128), jnp.float32),
        grid=(num_tiles,),
        in_specs=[
            pl.BlockSpec((tile_n, c), lambda i: (i, 0)),
            pl.BlockSpec((tile_n, 1), lambda i: (i, 0)),
            pl.BlockSpec((tile_n, 1), lambda i: (i, 0)),
        ],
        out_specs=pl.BlockSpec((1, 8, 128), lambda i: (i, 0, 0)),
        compiler_params=pltpu.CompilerParams(
            dimension_semantics=("parallel",),
            vmem_limit_bytes=int(vmem_cap * 3 // 4),
        ),
    )(logits, tgt2d, w2d)

    # Two-level reduction: per-tile partials (each replicated across its slab)
    # are summed in the wrapper; divide-by-N happens exactly once here.
    total = jnp.sum(out[:, 0, 0])
    return total * (1.0 / float(n))


class CrossEntropy:
    """JAX/Pallas port of the PyTorch CrossEntropy module (forward pass)."""

    def __init__(self, label_smoothing: float):
        self.label_smoothing = float(label_smoothing)

    def __call__(self, logits, targets, mask=None):
        n, _ = logits.shape
        if mask is None:
            # torch.nn.CrossEntropyLoss(label_smoothing=eps), reduction='mean'
            eps = self.label_smoothing
            weight = jnp.ones((n,), dtype=jnp.float32)
        else:
            # F.cross_entropy(reduction='none') * mask, then .mean()  (no smoothing)
            eps = 0.0
            weight = mask.astype(jnp.float32).reshape(n)
        return _cross_entropy_pallas(logits, targets, weight, eps)


def _ref_loss(logits, targets, mask, eps):
    """Pure-JAX reference mirroring the torch semantics (for verification)."""
    x = logits.astype(jnp.float32)
    n, c = x.shape
    lse = jax.nn.logsumexp(x, axis=-1)
    z_t = x[jnp.arange(n), targets]
    nll = lse - z_t
    if mask is None:
        smooth = lse - x.sum(-1) / c
        loss = (1.0 - eps) * nll + eps * smooth
        return loss.mean()
    return (nll * mask.astype(jnp.float32)).mean()


if __name__ == "__main__":
    key = jax.random.PRNGKey(0)
    k1, k2, k3, k4, k5, k6 = jax.random.split(key, 6)

    ce = CrossEntropy(label_smoothing=0.1)

    # Case 1: N divisible by the row tile.
    N1, C = 8, 32
    logits1 = jax.random.normal(k1, (N1, C), dtype=jnp.float32)
    targets1 = jax.random.randint(k2, (N1,), 0, C, dtype=jnp.int32)
    mask1 = (jax.random.uniform(k3, (N1,)) > 0.5).astype(jnp.float32)

    loss_unmasked1 = ce(logits1, targets1, mask=None)
    loss_masked1 = ce(logits1, targets1, mask=mask1)

    # Case 2: ragged N (exercises the in-kernel row-validity mask, no padding).
    N2 = 13
    logits2 = jax.random.normal(k4, (N2, C), dtype=jnp.float32)
    targets2 = jax.random.randint(k5, (N2,), 0, C, dtype=jnp.int32)
    mask2 = (jax.random.uniform(k6, (N2,)) > 0.5).astype(jnp.float32)

    loss_unmasked2 = ce(logits2, targets2, mask=None)
    loss_masked2 = ce(logits2, targets2, mask=mask2)

    results = (loss_unmasked1, loss_masked1, loss_unmasked2, loss_masked2)
    jax.block_until_ready(results)

    refs = (
        _ref_loss(logits1, targets1, None, 0.1),
        _ref_loss(logits1, targets1, mask1, 0.0),
        _ref_loss(logits2, targets2, None, 0.1),
        _ref_loss(logits2, targets2, mask2, 0.0),
    )
    for got, ref in zip(results, refs):
        assert jnp.allclose(got, ref, rtol=1e-4, atol=1e-4), (got, ref)

    print("KERNEL_OK")
</pallas_src>

<mosaic_0001>
module attributes {stable_mosaic.version = 11 : i64} {
  func.func @_ce_kernel(%arg0: i32, %arg1: memref<8x32xf32, #tpu.memory_space<vmem>>, %arg2: memref<8x1xi32, #tpu.memory_space<vmem>>, %arg3: memref<8x1xf32, #tpu.memory_space<vmem>>, %arg4: memref<1x8x128xf32, #tpu.memory_space<vmem>>) attributes {dimension_semantics = [#tpu.dimension_semantics<parallel>], iteration_bounds = array<i64: 1>, scalar_prefetch = 0 : i64, scratch_operands = 0 : i64, tpu.core_type = #tpu.core_type<tc>, window_params = [{transform_indices = @transform_0, window_bounds = array<i64: 8, 32>}, {transform_indices = @transform_1, window_bounds = array<i64: 8, 1>}, {transform_indices = @transform_2, window_bounds = array<i64: 8, 1>}, {transform_indices = @transform_3, window_bounds = array<i64: 1, 8, 128>}]} {
    %c0 = arith.constant 0 : index
    %c0_0 = arith.constant 0 : index
    %0 = vector.load %arg1[%c0, %c0_0] : memref<8x32xf32, #tpu.memory_space<vmem>>, vector<8x32xf32>
    %cst = arith.constant dense<0xFF800000> : vector<8xf32>
    %1 = vector.multi_reduction <maximumf>, %0, %cst [1] : vector<8x32xf32> to vector<8xf32>
    %2 = vector.shape_cast %1 : vector<8xf32> to vector<8x1xf32>
    %3 = vector.broadcast %2 : vector<8x1xf32> to vector<8x32xf32>
    %4 = arith.subf %0, %3 : vector<8x32xf32>
    %5 = math.exp %4 : vector<8x32xf32>
    %cst_1 = arith.constant dense<0.000000e+00> : vector<8xf32>
    %6 = vector.multi_reduction <add>, %5, %cst_1 [1] : vector<8x32xf32> to vector<8xf32>
    %7 = vector.shape_cast %6 : vector<8xf32> to vector<8x1xf32>
    %8 = math.log %7 : vector<8x1xf32>
    %9 = tpu.iota {dimensions = array<i32: 1>} : vector<1x32xi32>
    %c0_2 = arith.constant 0 : index
    %c0_3 = arith.constant 0 : index
    %10 = vector.load %arg2[%c0_2, %c0_3] : memref<8x1xi32, #tpu.memory_space<vmem>>, vector<8x1xi32>
    %11 = vector.broadcast %9 : vector<1x32xi32> to vector<8x32xi32>
    %12 = vector.broadcast %10 : vector<8x1xi32> to vector<8x32xi32>
    %13 = arith.cmpi eq, %11, %12 : vector<8x32xi32>
    %cst_4 = arith.constant 0.000000e+00 : f32
    %14 = vector.broadcast %cst_4 : f32 to vector<8x32xf32>
    %15 = arith.select %13, %0, %14 : vector<8x32xi1>, vector<8x32xf32>
    %cst_5 = arith.constant dense<0.000000e+00> : vector<8xf32>
    %16 = vector.multi_reduction <add>, %15, %cst_5 [1] : vector<8x32xf32> to vector<8xf32>
    %17 = vector.shape_cast %16 : vector<8xf32> to vector<8x1xf32>
    %18 = arith.subf %17, %2 : vector<8x1xf32>
    %19 = arith.subf %8, %18 : vector<8x1xf32>
    %cst_6 = arith.constant dense<0.000000e+00> : vector<8xf32>
    %20 = vector.multi_reduction <add>, %0, %cst_6 [1] : vector<8x32xf32> to vector<8xf32>
    %21 = vector.shape_cast %20 : vector<8xf32> to vector<8x1xf32>
    %cst_7 = arith.constant 3.200000e+01 : f32
    %22 = vector.broadcast %cst_7 : f32 to vector<8x1xf32>
    %23 = arith.mulf %22, %2 : vector<8x1xf32>
    %24 = arith.subf %21, %23 : vector<8x1xf32>
    %cst_8 = arith.constant 3.200000e+01 : f32
    %25 = vector.broadcast %cst_8 : f32 to vector<8x1xf32>
    %26 = arith.divf %24, %25 : vector<8x1xf32>
    %27 = arith.subf %8, %26 : vector<8x1xf32>
    %cst_9 = arith.constant 0.899999976 : f32
    %28 = vector.broadcast %cst_9 : f32 to vector<8x1xf32>
    %29 = arith.mulf %28, %19 : vector<8x1xf32>
    %cst_10 = arith.constant 1.000000e-01 : f32
    %30 = vector.broadcast %cst_10 : f32 to vector<8x1xf32>
    %31 = arith.mulf %30, %27 : vector<8x1xf32>
    %32 = arith.addf %29, %31 : vector<8x1xf32>
    %c8_i32 = arith.constant 8 : i32
    %33 = arith.muli %arg0, %c8_i32 : i32
    %34 = tpu.iota {dimensions = array<i32: 0>} : vector<8x1xi32>
    %35 = vector.broadcast %33 : i32 to vector<8x1xi32>
    %36 = arith.addi %35, %34 : vector<8x1xi32>
    %c8_i32_11 = arith.constant 8 : i32
    %37 = vector.broadcast %c8_i32_11 : i32 to vector<8x1xi32>
    %38 = arith.cmpi slt, %36, %37 : vector<8x1xi32>
    %c0_12 = arith.constant 0 : index
    %c0_13 = arith.constant 0 : index
    %39 = vector.load %arg3[%c0_12, %c0_13] : memref<8x1xf32, #tpu.memory_space<vmem>>, vector<8x1xf32>
    %40 = arith.mulf %32, %39 : vector<8x1xf32>
    %cst_14 = arith.constant 0.000000e+00 : f32
    %41 = vector.broadcast %cst_14 : f32 to vector<8x1xf32>
    %42 = arith.select %38, %40, %41 : vector<8x1xi1>, vector<8x1xf32>
    %43 = vector.shape_cast %42 : vector<8x1xf32> to vector<1x8x1xf32>
    %cst_15 = arith.constant dense<0.000000e+00> : vector<1xf32>
    %44 = vector.multi_reduction <add>, %43, %cst_15 [1, 2] : vector<1x8x1xf32> to vector<1xf32>
    %45 = vector.shape_cast %44 : vector<1xf32> to vector<1x1x1xf32>
    %46 = vector.extract %45[0, 0, 0] : f32 from vector<1x1x1xf32>
    %47 = vector.broadcast %46 : f32 to vector<1x8x128xf32>
    %c0_16 = arith.constant 0 : index
    %c0_17 = arith.constant 0 : index
    %c0_18 = arith.constant 0 : index
    %48 = vector.load %arg4[%c0_16, %c0_17, %c0_18] : memref<1x8x128xf32, #tpu.memory_space<vmem>>, vector<1x8x128xf32>
    tpu.vector_store %arg4[%c0_16, %c0_17, %c0_18], %47 {strides = array<i32>} : memref<1x8x128xf32, #tpu.memory_space<vmem>>, vector<1x8x128xf32>,
    return
  }
  func.func @transform_0(%arg0: i32) -> (i32, i32) {
    %c0_i32 = arith.constant 0 : i32
    %c0_i32_0 = arith.constant 0 : i32
    return %arg0, %c0_i32 : i32, i32
  }
  func.func @transform_1(%arg0: i32) -> (i32, i32) {
    %c0_i32 = arith.constant 0 : i32
    %c0_i32_0 = arith.constant 0 : i32
    return %arg0, %c0_i32 : i32, i32
  }
  func.func @transform_2(%arg0: i32) -> (i32, i32) {
    %c0_i32 = arith.constant 0 : i32
    %c0_i32_0 = arith.constant 0 : i32
    return %arg0, %c0_i32 : i32, i32
  }
  func.func @transform_3(%arg0: i32) -> (i32, i32, i32) {
    %c0_i32 = arith.constant 0 : i32
    %c0_i32_0 = arith.constant 0 : i32
    %c0_i32_1 = arith.constant 0 : i32
    return %arg0, %c0_i32, %c0_i32_0 : i32, i32, i32
  }
}

</mosaic_0001>

<bundles_post_ra>
// kernel: tpu_custom_call.1
= control target key start
LH: loop header
LB: loop body
LE: loop exit
PB: predicated region body
PF: predicated region fallthrough
CT: control target
= control target key end

     0   :  { %vm16_vm0 = vcmask 261120   ;;  %s157_s0 = inlined_call_operand.vmem [shape: f32[8,32], index: 0, kind: input, shape index: {}]   ;;  %s158_s1 = inlined_call_operand.vmem [shape: s32[8,1], index: 1, kind: input, shape index: {}]   ;;  %s159_s2 = inlined_call_operand.vmem [shape: f32[8,1], index: 2, kind: input, shape index: {}]   ;;  %s160_s3 = inlined_call_operand.hbm [shape: f32[1,8,128], index: 3, kind: output, shape index: {}]  }
   0x1   :  { %v15_v0 = vld [vmem:[%s157_s0] sm:$0xff] }
   0x2   :  { %8 = vsyncpa [#allocation3], 0  ;;  %v17_v1 = vsel %vm16_vm0, %v15_v0, -inf  ;;  %v119_v2 = vmov 0   ;;  %v30_v3 = vld [vmem:[%s158_s1] sm:$0xff]  ;;  %v28_v7 = vlaneseq  ;;  %v41_v12 = vsel %vm16_vm0, %v15_v0, 0.0 }
   0x3   :  { %92 = vset.pattern.permute.xlu0 %v119_v2  ;;  %v58_v28 = vld [vmem:[%s159_s2] sm:$0xff]  ;;  %vm61_vm2 = vcmask 7168   ;;  %s120_s16 = smov [#allocation2]  }
   0x4   :  { %18 = vmax.xlane.f32.xlu0 %v17_v1  ;;  %v29_v8 = vand.u32 127, %v28_v7  ;;  %s80_s17 = sshll.u32 %s120_s16, 4  ;;  %s81_s17 = int_to_ptr.vmem [resolvable:$true] %s80_s17 }
   0x5   :  { %s97_s2 = scalar_lea.vmem %s81_s17, 128  ;;  %p102_p1 = scmp.lt.s32.totalorder %s81_s17, %s81_s17 }
   0x6   :  { %p98_p0 = scmp.ne.s32.totalorder %s81_s17, %s97_s2  ;;  %p103_p2 = scmp.lt.s32.totalorder %s97_s2, %s97_s2 }
   0x8   :  { %p104_p3 = por %p103_p2, %p102_p1 }
   0xa   :  { %p105_p4 = pnand %p104_p3, %p98_p0 }
  0x1a   :  { %32 = vperm.xlu0 %92, %v30_v3  }
  0x8d   :  { %v19_v4 = vpop.xlane.xlu0 %18 }
  0x8e   :  { %v20_v5 = vsub.f32 %v15_v0, %v19_v4  ;;  %v44_v17 = vmul.f32 32.0, %v19_v4 }
  0x90   :  { %v21_v6 = vmul.f32 1.442695, %v20_v5 }
  0x92   :  { %93 = vpow2.f32 %v21_v6 }
  0x95   :  { %v33_v9 = vpop.permute.xlu0 %32 }
  0x96   :  { %vm34_vm1 = vcmp.eq.s32.totalorder %v29_v8, %v33_v9 }
  0x97   :  { %v35_v13 = vsel %vm34_vm1, %v15_v0, 0.0 }
  0x98   :  { %v36_v14 = vsel %vm16_vm0, %v35_v13, 0.0 }
  0x9f   :  { %v94_v10 = vpop.eup %93 }
  0xa0   :  { %v23_v11 = vsel %vm16_vm0, %v94_v10, 0.0 }
  0xa1   :  { %24 = vadd.xlane.f32.xlu1 %v23_v11 }
  0xa5   :  { %42 = vadd.xlane.f32.xlu1 %v41_v12 }
  0xa9   :  { %37 = vadd.xlane.f32.xlu1 %v36_v14 }
 0x12a   :  { %v25_v15 = vpop.xlane.xlu1 %24 }
 0x12b   :  { %95 = vlog2.f32 %v25_v15 }
 0x12e   :  { %v43_v16 = vpop.xlane.xlu1 %42 }
 0x12f   :  { %v45_v18 = vsub.f32 %v43_v16, %v44_v17 }
 0x131   :  { %v47_v22 = vmul.f32 0.03125, %v45_v18 }
 0x132   :  { %v38_v19 = vpop.xlane.xlu1 %37 }
 0x133   :  { %v39_v23 = vsub.f32 %v38_v19, %v19_v4 }
 0x138   :  { %v96_v20 = vpop.eup %95 }
 0x139   :  { %v27_v21 = vmul.f32 0.6931472, %v96_v20 }
 0x13b   :  { %v48_v24 = vsub.f32 %v27_v21, %v47_v22  ;;  %v40_v25 = vsub.f32 %v27_v21, %v39_v23 }
 0x13d   :  { %v50_v26 = vmul.f32 0.1, %v48_v24  ;;  %v49_v27 = vmul.f32 0.9, %v40_v25 }
 0x13f   :  { %v51_v29 = vadd.f32 %v50_v26, %v49_v27 }
 0x141   :  { %v59_v30 = vmul.f32 %v58_v28, %v51_v29 }
 0x143   :  { %v62_v31 = vsel %vm61_vm2, %v59_v30, 0.0 }
 0x144   :  { %63 = vadd.xlane.f32.xlu1 %v62_v31 }
 0x1cd   :  { %v64_v32 = vpop.xlane.xlu1 %63 }
 0x1ce   :  { %v65_v33 = vrot.slane %v64_v32, 4 }
 0x1d0   :  { %v66_v34 = vadd.f32 %v65_v33, %v64_v32 }
 0x1d2   :  { %v67_v35 = vrot.slane %v66_v34, 2 }
 0x1d4   :  { %v68_v36 = vadd.f32 %v67_v35, %v66_v34 }
 0x1d6   :  { %v69_v37 = vrot.slane %v68_v36, 1 }
 0x1d8   :  { %v70_v38 = vadd.f32 %v69_v37, %v68_v36 }
 0x1da   :  { %88 = vpush %v70_v38 }
 0x20b   :  { %s89_s18 = spop %88 }
 0x20c   :  { %v72_v39 = vstv %s89_s18 }
 0x20d   :  { %73 = vst [vmem:[#allocation2] sm:$0xff] %v72_v39 }
 0x20e   :  { %108 = shalt.err (!%p105_p4)
}
 0x20f   :  { %83 = dma.vmem_to_hbm [thread:$0]  %s81_s17, 128, %s160_s3, [#allocation3]  }
 0x210   :  { %117 = dma.done.wait [#allocation3], 128  }
 0x211   :  { %118 = vsyncadd [#allocation3], 4294967168 }
 0x212   :  { %87 = vsyncpa [#allocation3], 1 }

</bundles_post_ra>
